<compile_context>
chip_gen: v6e
topology: v6e:2x2x1
jax: 0.10.0
libtpu: 0.0.40
codegen_flags: <defaults>
</compile_context>

<pallas_src>
import functools

import jax
import jax.numpy as jnp
from jax.experimental import pallas as pl
from jax.experimental.pallas import tpu as pltpu


def _vgg_block_kernel(x_ref, t_ref, bn_ref, fold_ref, foldt_ref, o_ref, act_ref):
    """One grid step == one (Conv3x3 + BN + ReLU) layer.

    x_ref    : (N, H+2, W*C)    spatially pre-padded, channel-padded input
    t_ref    : (1, 3, W*C, W*C) this layer's block-Toeplitz conv weights
    bn_ref   : (1, 2, C)        [gamma; beta] for this layer
    fold_ref : (W*C, C)         0/1 fold matrix: lane w*C+c -> channel c
    foldt_ref: (C, W*C)         its transpose (channel -> lane broadcast)
    o_ref    : (N, H, W*C)      lane-dense output (written at the last layer)
    act_ref  : (N, H+2, W*C)    persistent VMEM activation buffer (f32)
    """
    layer = pl.program_id(0)
    last = pl.num_programs(0) - 1
    N, Hp, WC = act_ref.shape
    H = Hp - 2
    C = bn_ref.shape[-1]
    W = WC // C

    # Layer 0: bring the padded input into the persistent activation buffer.
    # The zero border rows written here are never overwritten afterwards.
    @pl.when(layer == 0)
    def _():
        act_ref[...] = x_ref[...]

    # --- 3x3 conv as 3 lane-dense block-Toeplitz matmuls on the MXU --------
    acc = jnp.zeros((N * H, WC), jnp.float32)
    for dh in range(3):
        slab = act_ref[:, dh:dh + H, :].reshape(N * H, WC)
        acc = acc + jnp.dot(slab, t_ref[0, dh],
                            preferred_element_type=jnp.float32)

    # --- BatchNorm2d (training-mode) stats, single fused pass --------------
    colsum = jnp.sum(acc, axis=0, keepdims=True)          # (1, W*C)
    colsq = jnp.sum(acc * acc, axis=0, keepdims=True)     # (1, W*C)
    stats = jnp.dot(jnp.concatenate([colsum, colsq], axis=0), fold_ref[...],
                    preferred_element_type=jnp.float32)   # (2, C)
    inv_cnt = 1.0 / float(N * H * W)
    mean = stats[0:1, :] * inv_cnt                        # (1, C)
    var = stats[1:2, :] * inv_cnt - mean * mean           # biased variance

    bn = bn_ref[...]                                      # (1, 2, C)
    gamma = bn[0, 0:1, :]
    beta = bn[0, 1:2, :]
    scale = gamma * jax.lax.rsqrt(var + 1e-5)             # (1, C)
    shift = beta - mean * scale                           # (1, C)

    # Broadcast per-channel scale/shift back to the lane-dense layout.
    ss = jnp.dot(jnp.concatenate([scale, shift], axis=0), foldt_ref[...],
                 preferred_element_type=jnp.float32)      # (2, W*C)

    # --- normalize + ReLU at full 128-lane occupancy ------------------------
    y = jnp.maximum(acc * ss[0:1, :] + ss[1:2, :], 0.0)   # (N*H, W*C)

    # Feed the next layer (interior rows of the padded activation buffer) ...
    @pl.when(layer < last)
    def _():
        act_ref[:, 1:H + 1, :] = y.reshape(N, H, WC)

    # ... or emit the final lane-dense output.
    @pl.when(layer == last)
    def _():
        o_ref[...] = y.reshape(N, H, WC).astype(o_ref.dtype)


def _build_toeplitz(w_hwio_pad, W, C):
    """(3,3,C,C) HWIO weights -> (3, W*C, W*C) per-dh block-Toeplitz matrices.

    T[dh][(w+dw-1)*C + ci, w*C + co] = w[dh, dw, ci, co]; out-of-range width
    taps are dropped, which implements the padding=1 zero-pad along W.
    """
    taps = []
    for dh in range(3):
        t = jnp.zeros((W * C, W * C), jnp.float32)
        for dw in range(3):
            shift = jnp.eye(W, k=1 - dw, dtype=jnp.float32)
            t = t + jnp.kron(shift, w_hwio_pad[dh, dw])
        taps.append(t)
    return jnp.stack(taps)


def _vgg_block_forward(x_nchw, params, out_channels):
    N, Cin, H, W = x_nchw.shape
    num_layers = len(params)
    C = max(Cin, out_channels)          # pad channels so every layer is uniform
    WC = W * C

    # NCHW -> lane-dense padded layout (N, H+2, W*C), f32.  Single pad at entry;
    # per-layer padding is handled inside the kernel's persistent scratch.
    x = jnp.transpose(x_nchw, (0, 2, 3, 1)).astype(jnp.float32)     # (N,H,W,Cin)
    x = jnp.pad(x, ((0, 0), (1, 1), (0, 0), (0, C - Cin)))          # (N,H+2,W,C)
    x = x.reshape(N, H + 2, WC)

    t_layers, bn_layers = [], []
    for (w_hwio, _bias, gamma, beta) in params:   # conv bias cancelled by BN
        ci, co = w_hwio.shape[2], w_hwio.shape[3]
        w_pad = jnp.pad(w_hwio, ((0, 0), (0, 0), (0, C - ci), (0, C - co)))
        t_layers.append(_build_toeplitz(w_pad, W, C))               # (3, WC, WC)
        bn_layers.append(jnp.stack([jnp.pad(gamma, (0, C - co)),
                                    jnp.pad(beta, (0, C - co))]))   # (2, C)
    t_all = jnp.stack(t_layers)                                     # (L,3,WC,WC)
    bn_all = jnp.stack(bn_layers)                                   # (L,2,C)

    fold = jnp.tile(jnp.eye(C, dtype=jnp.float32), (W, 1))          # (WC, C)
    fold_t = jnp.transpose(fold)                                    # (C, WC)

    out = pl.pallas_call(
        _vgg_block_kernel,
        out_shape=jax.ShapeDtypeStruct((N, H, WC), jnp.float32),
        grid_spec=pltpu.PrefetchScalarGridSpec(
            num_scalar_prefetch=0,
            grid=(num_layers,),
            in_specs=[
                pl.BlockSpec((N, H + 2, WC), lambda l: (0, 0, 0)),      # input
                pl.BlockSpec((1, 3, WC, WC), lambda l: (l, 0, 0, 0)),   # weights
                pl.BlockSpec((1, 2, C), lambda l: (l, 0, 0)),           # BN g/b
                pl.BlockSpec((WC, C), lambda l: (0, 0)),                # fold
                pl.BlockSpec((C, WC), lambda l: (0, 0)),                # fold^T
            ],
            out_specs=pl.BlockSpec((N, H, WC), lambda l: (0, 0, 0)),
            scratch_shapes=[pltpu.VMEM((N, H + 2, WC), jnp.float32)],
        ),
        compiler_params=pltpu.CompilerParams(
            dimension_semantics=("arbitrary",),   # layers are sequential
        ),
    )(x, t_all, bn_all, fold, fold_t)

    out = out.reshape(N, H, W, C)[:, :, :, :out_channels]
    return jnp.transpose(out, (0, 3, 1, 2))       # -> NCHW


@functools.partial(jax.jit, static_argnums=(2,))
def _forward_jit(x_nchw, params, out_channels):
    return _vgg_block_forward(x_nchw, params, out_channels)


class VGGBlockPallas:
    """Mirror of the PyTorch VGGBlock; parameters initialized deterministically."""

    def __init__(self, in_channels, out_channels, num_layers, key):
        self.out_channels = out_channels
        self.params = []
        c_in = in_channels
        for _ in range(num_layers):
            key, kw, kb = jax.random.split(key, 3)
            fan_in = c_in * 3 * 3
            bound = 1.0 / jnp.sqrt(fan_in)
            # PyTorch Conv2d weight layout is (Cout, Cin, 3, 3); convert to HWIO.
            w_oihw = jax.random.uniform(kw, (out_channels, c_in, 3, 3),
                                        jnp.float32, -bound, bound)
            w_hwio = jnp.transpose(w_oihw, (2, 3, 1, 0))
            b = jax.random.uniform(kb, (out_channels,), jnp.float32,
                                   -bound, bound)
            gamma = jnp.ones((out_channels,), jnp.float32)    # BN default init
            beta = jnp.zeros((out_channels,), jnp.float32)
            self.params.append((w_hwio, b, gamma, beta))
            c_in = out_channels

    def __call__(self, x_nchw):
        return _forward_jit(x_nchw, tuple(self.params), self.out_channels)


def _reference(x_nchw, params):
    """Pure-JAX NCHW reference (conv+bias, train-mode BN, ReLU) for sanity check."""
    x = x_nchw
    for (w_hwio, b, g, bt) in params:
        w_oihw = jnp.transpose(w_hwio, (3, 2, 0, 1))
        y = jax.lax.conv_general_dilated(
            x, w_oihw, window_strides=(1, 1), padding=((1, 1), (1, 1)),
            dimension_numbers=("NCHW", "OIHW", "NCHW"))
        y = y + b[None, :, None, None]
        mean = jnp.mean(y, axis=(0, 2, 3), keepdims=True)
        var = jnp.mean((y - mean) ** 2, axis=(0, 2, 3), keepdims=True)
        y = (y - mean) * jax.lax.rsqrt(var + 1e-5)
        y = y * g[None, :, None, None] + bt[None, :, None, None]
        x = jnp.maximum(y, 0.0)
    return x


if __name__ == "__main__":
    key = jax.random.PRNGKey(0)
    key, kx, kp = jax.random.split(key, 3)

    in_channels, out_channels, num_layers = 4, 8, 2
    x = jax.random.normal(kx, (2, in_channels, 16, 16), jnp.float32)  # NCHW

    block = VGGBlockPallas(in_channels, out_channels, num_layers, kp)

    out = jax.block_until_ready(block(x))

    ref = _reference(x, block.params)
    assert out.shape == ref.shape == (2, out_channels, 16, 16)
    assert jnp.allclose(out, ref, atol=1e-2, rtol=1e-2)

    print("KERNEL_OK")
</pallas_src>

<mosaic_0001>
module attributes {stable_mosaic.version = 11 : i64} {
  func.func @_vgg_block_kernel(%arg0: i32, %arg1: memref<2x18x128xf32, #tpu.memory_space<vmem>>, %arg2: memref<1x3x128x128xf32, #tpu.memory_space<vmem>>, %arg3: memref<1x2x8xf32, #tpu.memory_space<vmem>>, %arg4: memref<128x8xf32, #tpu.memory_space<vmem>>, %arg5: memref<8x128xf32, #tpu.memory_space<vmem>>, %arg6: memref<2x16x128xf32, #tpu.memory_space<vmem>>, %arg7: memref<2x18x128xf32, #tpu.memory_space<vmem>>) attributes {dimension_semantics = [#tpu.dimension_semantics<arbitrary>], iteration_bounds = array<i64: 2>, scalar_prefetch = 0 : i64, scratch_operands = 1 : i64, tpu.core_type = #tpu.core_type<tc>, window_params = [{pipeline_mode = #tpu.pipeline_mode<synchronous>, transform_indices = @transform_0, window_bounds = array<i64: 2, 18, 128>}, {transform_indices = @transform_1, window_bounds = array<i64: 1, 3, 128, 128>}, {transform_indices = @transform_2, window_bounds = array<i64: 1, 2, 8>}, {pipeline_mode = #tpu.pipeline_mode<synchronous>, transform_indices = @transform_3, window_bounds = array<i64: 128, 8>}, {pipeline_mode = #tpu.pipeline_mode<synchronous>, transform_indices = @transform_4, window_bounds = array<i64: 8, 128>}, {pipeline_mode = #tpu.pipeline_mode<synchronous>, transform_indices = @transform_5, window_bounds = array<i64: 2, 16, 128>}]} {
    %c0_i32 = arith.constant 0 : i32
    %0 = arith.cmpi eq, %arg0, %c0_i32 : i32
    %1 = arith.extui %0 : i1 to i32
    %c0_i32_0 = arith.constant 0 : i32
    %2 = arith.cmpi ne, %1, %c0_i32_0 : i32
    scf.if %2 {
      %c0_40 = arith.constant 0 : index
      %c0_41 = arith.constant 0 : index
      %c0_42 = arith.constant 0 : index
      %66 = vector.load %arg1[%c0_40, %c0_41, %c0_42] : memref<2x18x128xf32, #tpu.memory_space<vmem>>, vector<2x18x128xf32>
      %c0_43 = arith.constant 0 : index
      %c0_44 = arith.constant 0 : index
      %c0_45 = arith.constant 0 : index
      %67 = vector.load %arg7[%c0_43, %c0_44, %c0_45] : memref<2x18x128xf32, #tpu.memory_space<vmem>>, vector<2x18x128xf32>
      tpu.vector_store %arg7[%c0_43, %c0_44, %c0_45], %66 {strides = array<i32>} : memref<2x18x128xf32, #tpu.memory_space<vmem>>, vector<2x18x128xf32>,
    } else {
    }
    %cst = arith.constant 0.000000e+00 : f32
    %3 = vector.broadcast %cst : f32 to vector<32x128xf32>
    %c0 = arith.constant 0 : index
    %c0_1 = arith.constant 0 : index
    %c0_2 = arith.constant 0 : index
    %4 = vector.load %arg7[%c0, %c0_1, %c0_2] : memref<2x18x128xf32, #tpu.memory_space<vmem>>, vector<2x16x128xf32>
    %5 = vector.shape_cast %4 : vector<2x16x128xf32> to vector<32x128xf32>
    %c0_3 = arith.constant 0 : index
    %c0_4 = arith.constant 0 : index
    %c0_5 = arith.constant 0 : index
    %c0_6 = arith.constant 0 : index
    %6 = vector.load %arg2[%c0_3, %c0_4, %c0_5, %c0_6] : memref<1x3x128x128xf32, #tpu.memory_space<vmem>>, vector<1x1x128x128xf32>
    %7 = vector.shape_cast %6 : vector<1x1x128x128xf32> to vector<128x128xf32>
    %cst_7 = arith.constant dense<0.000000e+00> : vector<32x128xf32>
    %8 = tpu.matmul %5, %7, %cst_7 {dimension_numbers = #tpu.dot_dimension_numbers<[1], [0], [0], [1], [0, 0, 1, 1], [], []>} : vector<32x128xf32>, vector<128x128xf32>, vector<32x128xf32> -> vector<32x128xf32>
    %9 = arith.addf %3, %8 : vector<32x128xf32>
    %c0_8 = arith.constant 0 : index
    %c1 = arith.constant 1 : index
    %c0_9 = arith.constant 0 : index
    %10 = vector.load %arg7[%c0_8, %c1, %c0_9] : memref<2x18x128xf32, #tpu.memory_space<vmem>>, vector<2x16x128xf32>
    %11 = vector.shape_cast %10 : vector<2x16x128xf32> to vector<32x128xf32>
    %c0_10 = arith.constant 0 : index
    %c1_11 = arith.constant 1 : index
    %c0_12 = arith.constant 0 : index
    %c0_13 = arith.constant 0 : index
    %12 = vector.load %arg2[%c0_10, %c1_11, %c0_12, %c0_13] : memref<1x3x128x128xf32, #tpu.memory_space<vmem>>, vector<1x1x128x128xf32>
    %13 = vector.shape_cast %12 : vector<1x1x128x128xf32> to vector<128x128xf32>
    %cst_14 = arith.constant dense<0.000000e+00> : vector<32x128xf32>
    %14 = tpu.matmul %11, %13, %cst_14 {dimension_numbers = #tpu.dot_dimension_numbers<[1], [0], [0], [1], [0, 0, 1, 1], [], []>} : vector<32x128xf32>, vector<128x128xf32>, vector<32x128xf32> -> vector<32x128xf32>
    %15 = arith.addf %9, %14 : vector<32x128xf32>
    %c0_15 = arith.constant 0 : index
    %c2 = arith.constant 2 : index
    %c0_16 = arith.constant 0 : index
    %16 = vector.load %arg7[%c0_15, %c2, %c0_16] : memref<2x18x128xf32, #tpu.memory_space<vmem>>, vector<2x16x128xf32>
    %17 = vector.shape_cast %16 : vector<2x16x128xf32> to vector<32x128xf32>
    %c0_17 = arith.constant 0 : index
    %c2_18 = arith.constant 2 : index
    %c0_19 = arith.constant 0 : index
    %c0_20 = arith.constant 0 : index
    %18 = vector.load %arg2[%c0_17, %c2_18, %c0_19, %c0_20] : memref<1x3x128x128xf32, #tpu.memory_space<vmem>>, vector<1x1x128x128xf32>
    %19 = vector.shape_cast %18 : vector<1x1x128x128xf32> to vector<128x128xf32>
    %cst_21 = arith.constant dense<0.000000e+00> : vector<32x128xf32>
    %20 = tpu.matmul %17, %19, %cst_21 {dimension_numbers = #tpu.dot_dimension_numbers<[1], [0], [0], [1], [0, 0, 1, 1], [], []>} : vector<32x128xf32>, vector<128x128xf32>, vector<32x128xf32> -> vector<32x128xf32>
    %21 = arith.addf %15, %20 : vector<32x128xf32>
    %cst_22 = arith.constant dense<0.000000e+00> : vector<128xf32>
    %22 = vector.multi_reduction <add>, %21, %cst_22 [0] : vector<32x128xf32> to vector<128xf32>
    %23 = vector.shape_cast %22 : vector<128xf32> to vector<1x128xf32>
    %24 = arith.mulf %21, %21 : vector<32x128xf32>
    %cst_23 = arith.constant dense<0.000000e+00> : vector<128xf32>
    %25 = vector.multi_reduction <add>, %24, %cst_23 [0] : vector<32x128xf32> to vector<128xf32>
    %26 = vector.shape_cast %25 : vector<128xf32> to vector<1x128xf32>
    %27 = tpu.concatenate %23, %26 in 0 : vector<1x128xf32>, vector<1x128xf32> -> vector<2x128xf32>
    %c0_24 = arith.constant 0 : index
    %c0_25 = arith.constant 0 : index
    %28 = vector.load %arg4[%c0_24, %c0_25] : memref<128x8xf32, #tpu.memory_space<vmem>>, vector<128x8xf32>
    %cst_26 = arith.constant dense<0.000000e+00> : vector<2x8xf32>
    %29 = tpu.matmul %27, %28, %cst_26 {dimension_numbers = #tpu.dot_dimension_numbers<[1], [0], [0], [1], [0, 0, 1, 1], [], []>} : vector<2x128xf32>, vector<128x8xf32>, vector<2x8xf32> -> vector<2x8xf32>
    %30 = vector.extract_strided_slice %29 {offsets = [0, 0], sizes = [1, 8], strides = [1, 1]} : vector<2x8xf32> to vector<1x8xf32>
    %cst_27 = arith.constant 0.001953125 : f32
    %31 = vector.broadcast %cst_27 : f32 to vector<1x8xf32>
    %32 = arith.mulf %30, %31 : vector<1x8xf32>
    %33 = vector.extract_strided_slice %29 {offsets = [1, 0], sizes = [1, 8], strides = [1, 1]} : vector<2x8xf32> to vector<1x8xf32>
    %cst_28 = arith.constant 0.001953125 : f32
    %34 = vector.broadcast %cst_28 : f32 to vector<1x8xf32>
    %35 = arith.mulf %33, %34 : vector<1x8xf32>
    %36 = arith.mulf %32, %32 : vector<1x8xf32>
    %37 = arith.subf %35, %36 : vector<1x8xf32>
    %c0_29 = arith.constant 0 : index
    %c0_30 = arith.constant 0 : index
    %c0_31 = arith.constant 0 : index
    %38 = vector.load %arg3[%c0_29, %c0_30, %c0_31] : memref<1x2x8xf32, #tpu.memory_space<vmem>>, vector<1x2x8xf32>
    %39 = vector.extract_strided_slice %38 {offsets = [0, 0, 0], sizes = [1, 1, 8], strides = [1, 1, 1]} : vector<1x2x8xf32> to vector<1x1x8xf32>
    %40 = vector.shape_cast %39 : vector<1x1x8xf32> to vector<1x8xf32>
    %41 = vector.extract_strided_slice %38 {offsets = [0, 1, 0], sizes = [1, 1, 8], strides = [1, 1, 1]} : vector<1x2x8xf32> to vector<1x1x8xf32>
    %42 = vector.shape_cast %41 : vector<1x1x8xf32> to vector<1x8xf32>
    %cst_32 = arith.constant 9.99999974E-6 : f32
    %43 = vector.broadcast %cst_32 : f32 to vector<1x8xf32>
    %44 = arith.addf %37, %43 : vector<1x8xf32>
    %45 = math.rsqrt %44 : vector<1x8xf32>
    %46 = arith.mulf %40, %45 : vector<1x8xf32>
    %47 = arith.mulf %32, %46 : vector<1x8xf32>
    %48 = arith.subf %42, %47 : vector<1x8xf32>
    %49 = tpu.concatenate %46, %48 in 0 : vector<1x8xf32>, vector<1x8xf32> -> vector<2x8xf32>
    %c0_33 = arith.constant 0 : index
    %c0_34 = arith.constant 0 : index
    %50 = vector.load %arg5[%c0_33, %c0_34] : memref<8x128xf32, #tpu.memory_space<vmem>>, vector<8x128xf32>
    %cst_35 = arith.constant dense<0.000000e+00> : vector<2x128xf32>
    %51 = tpu.matmul %49, %50, %cst_35 {dimension_numbers = #tpu.dot_dimension_numbers<[1], [0], [0], [1], [0, 0, 1, 1], [], []>} : vector<2x8xf32>, vector<8x128xf32>, vector<2x128xf32> -> vector<2x128xf32>
    %52 = vector.extract_strided_slice %51 {offsets = [0, 0], sizes = [1, 128], strides = [1, 1]} : vector<2x128xf32> to vector<1x128xf32>
    %53 = vector.broadcast %52 : vector<1x128xf32> to vector<32x128xf32>
    %54 = arith.mulf %21, %53 : vector<32x128xf32>
    %55 = vector.extract_strided_slice %51 {offsets = [1, 0], sizes = [1, 128], strides = [1, 1]} : vector<2x128xf32> to vector<1x128xf32>
    %56 = vector.broadcast %55 : vector<1x128xf32> to vector<32x128xf32>
    %57 = arith.addf %54, %56 : vector<32x128xf32>
    %cst_36 = arith.constant 0.000000e+00 : f32
    %58 = vector.broadcast %cst_36 : f32 to vector<32x128xf32>
    %59 = arith.maximumf %57, %58 : vector<32x128xf32>
    %c1_i32 = arith.constant 1 : i32
    %60 = arith.cmpi slt, %arg0, %c1_i32 : i32
    %61 = arith.extui %60 : i1 to i32
    %c0_i32_37 = arith.constant 0 : i32
    %62 = arith.cmpi ne, %61, %c0_i32_37 : i32
    scf.if %62 {
      %66 = vector.shape_cast %59 : vector<32x128xf32> to vector<2x16x128xf32>
      %c0_40 = arith.constant 0 : index
      %c1_41 = arith.constant 1 : index
      %c0_42 = arith.constant 0 : index
      %67 = vector.load %arg7[%c0_40, %c1_41, %c0_42] : memref<2x18x128xf32, #tpu.memory_space<vmem>>, vector<2x16x128xf32>
      tpu.vector_store %arg7[%c0_40, %c1_41, %c0_42], %66 {strides = array<i32>} : memref<2x18x128xf32, #tpu.memory_space<vmem>>, vector<2x16x128xf32>,
    } else {
    }
    %c1_i32_38 = arith.constant 1 : i32
    %63 = arith.cmpi eq, %arg0, %c1_i32_38 : i32
    %64 = arith.extui %63 : i1 to i32
    %c0_i32_39 = arith.constant 0 : i32
    %65 = arith.cmpi ne, %64, %c0_i32_39 : i32
    scf.if %65 {
      %66 = vector.shape_cast %59 : vector<32x128xf32> to vector<2x16x128xf32>
      %c0_40 = arith.constant 0 : index
      %c0_41 = arith.constant 0 : index
      %c0_42 = arith.constant 0 : index
      %67 = vector.load %arg6[%c0_40, %c0_41, %c0_42] : memref<2x16x128xf32, #tpu.memory_space<vmem>>, vector<2x16x128xf32>
      tpu.vector_store %arg6[%c0_40, %c0_41, %c0_42], %66 {strides = array<i32>} : memref<2x16x128xf32, #tpu.memory_space<vmem>>, vector<2x16x128xf32>,
    } else {
    }
    return
  }
  func.func @transform_0(%arg0: i32) -> (i32, i32, i32) {
    %c0_i32 = arith.constant 0 : i32
    %c0_i32_0 = arith.constant 0 : i32
    %c0_i32_1 = arith.constant 0 : i32
    %c0_i32_2 = arith.constant 0 : i32
    return %c0_i32, %c0_i32_0, %c0_i32_1 : i32, i32, i32
  }
  func.func @transform_1(%arg0: i32) -> (i32, i32, i32, i32) {
    %c0_i32 = arith.constant 0 : i32
    %c0_i32_0 = arith.constant 0 : i32
    %c0_i32_1 = arith.constant 0 : i32
    %c0_i32_2 = arith.constant 0 : i32
    return %arg0, %c0_i32, %c0_i32_0, %c0_i32_1 : i32, i32, i32, i32
  }
  func.func @transform_2(%arg0: i32) -> (i32, i32, i32) {
    %c0_i32 = arith.constant 0 : i32
    %c0_i32_0 = arith.constant 0 : i32
    %c0_i32_1 = arith.constant 0 : i32
    return %arg0, %c0_i32, %c0_i32_0 : i32, i32, i32
  }
  func.func @transform_3(%arg0: i32) -> (i32, i32) {
    %c0_i32 = arith.constant 0 : i32
    %c0_i32_0 = arith.constant 0 : i32
    %c0_i32_1 = arith.constant 0 : i32
    return %c0_i32, %c0_i32_0 : i32, i32
  }
  func.func @transform_4(%arg0: i32) -> (i32, i32) {
    %c0_i32 = arith.constant 0 : i32
    %c0_i32_0 = arith.constant 0 : i32
    %c0_i32_1 = arith.constant 0 : i32
    return %c0_i32, %c0_i32_0 : i32, i32
  }
  func.func @transform_5(%arg0: i32) -> (i32, i32, i32) {
    %c0_i32 = arith.constant 0 : i32
    %c0_i32_0 = arith.constant 0 : i32
    %c0_i32_1 = arith.constant 0 : i32
    %c0_i32_2 = arith.constant 0 : i32
    return %c0_i32, %c0_i32_0, %c0_i32_1 : i32, i32, i32
  }
}

</mosaic_0001>

<bundles_post_ra>
// kernel: tile.9
= control target key start
LH: loop header
LB: loop body
LE: loop exit
PB: predicated region body
PF: predicated region fallthrough
CT: control target
= control target key end

     0   :  { %vm6_vm0 = vcmask 1043458   ;;  %vm10_vm1 = vcmask 1045508   ;;  %vm14_vm2 = vcmask 1047558   ;;  %s19_s6 = smov 3  ;;  %s22_s7 = smov 12  ;;  %vm16_vm3 = vcmask 64512   ;;  %s736_s0 = inlined_call_operand.vmem [shape: f32[16,8,8], index: 0, kind: input, shape index: {}]   ;;  %s737_s1 = inlined_call_operand.vmem [shape: f32[128,8], index: 1, kind: output, shape index: {}]  }
   0x1   :  { %v348_v0 = vld [vmem:[%s736_s0 + $0xf] ss:$16 sm:%s19_s6]   ;;  %s27_s12 = smov 48  ;;  %s32_s13 = smov 192  ;;  %vm38_vm4 = vcmask 1048512   ;;  %vm60_vm5 = vcmask 982912  }
   0x2   :  { %v349_v1 = vld [vmem:[%s736_s0 + $0xf] ss:$16 sm:%s22_s7]   ;;  %s63_s18 = smov 3  ;;  %s66_s21 = smov 12  ;;  %vm82_vm6 = vcmask 917312   ;;  %vm104_vm7 = vcmask 851712  }
   0x3   :  { %v25_v2 = vsel %vm6_vm0, %v349_v1, %v348_v0  ;;  %v350_v3 = vld [vmem:[%s736_s0 + $0xf] ss:$16 sm:%s27_s12]   ;;  %v356_v6 = vld [vmem:[%s736_s0 + $0xd] ss:$16 sm:%s63_s18]   ;;  %s71_s22 = smov 48  ;;  %s76_s27 = smov 192 }
   0x4   :  { %v351_v4 = vld [vmem:[%s736_s0 + $0xf] ss:$16 sm:%s32_s13]   ;;  %v30_v5 = vsel %vm10_vm1, %v350_v3, %v25_v2  ;;  %v357_v8 = vld [vmem:[%s736_s0 + $0xd] ss:$16 sm:%s66_s21]   ;;  %s423_s28 = smov 120   ;;  %s41_s2 = smov 3 }
   0x5   :  { %v35_v7 = vsel %vm14_vm2, %v351_v4, %v30_v5  ;;  %v358_v9 = vld [vmem:[%s736_s0 + $0xd] ss:$16 sm:%s71_s22]   ;;  %v69_v10 = vsel %vm6_vm0, %v357_v8, %v356_v6  ;;  %s44_s3 = smov 12  ;;  %v352_v13 = vld [vmem:[%s736_s0 + $0xe] ss:$16 sm:%s41_s2]   ;;  %s49_s8 = smov 48 }
   0x6   :  { %36 = vrot.lane.b32.xlu0 %v35_v7, %s423_s28  ;;  %v359_v11 = vld [vmem:[%s736_s0 + $0xd] ss:$16 sm:%s76_s27]   ;;  %v74_v12 = vsel %vm10_vm1, %v358_v9, %v69_v10  ;;  %s54_s9 = smov 192  ;;  %s85_s14 = smov 3  ;;  %vm126_vm8 = vcmask 786112   ;;  %vm148_vm9 = vcmask 720512  }
   0x7   :  { %v353_v14 = vld [vmem:[%s736_s0 + $0xe] ss:$16 sm:%s44_s3]   ;;  %v79_v15 = vsel %vm14_vm2, %v359_v11, %v74_v12  ;;  %s424_s15 = smov 104   ;;  %v360_v20 = vld [vmem:[%s736_s0 + $0xc] ss:$16 sm:%s85_s14]   ;;  %s88_s18 = smov 12 }
   0x8   :  { %v47_v16 = vsel %vm6_vm0, %v353_v14, %v352_v13  ;;  %v354_v17 = vld [vmem:[%s736_s0 + $0xe] ss:$16 sm:%s49_s8]   ;;  %80 = vrot.lane.b32.xlu1 %v79_v15, %s424_s15  ;;  %s93_s19 = smov 48  ;;  %s98_s24 = smov 192  ;;  %vm170_vm10 = vcmask 654912   ;;  %vm192_vm11 = vcmask 589312  }
   0x9   :  { %v355_v18 = vld [vmem:[%s736_s0 + $0xe] ss:$16 sm:%s54_s9]   ;;  %v52_v19 = vsel %vm10_vm1, %v354_v17, %v47_v16  ;;  %v361_v22 = vld [vmem:[%s736_s0 + $0xc] ss:$16 sm:%s88_s18]   ;;  %s425_s25 = smov 112   ;;  %s107_s28 = smov 3 }
   0xa   :  { %v57_v21 = vsel %vm14_vm2, %v355_v18, %v52_v19  ;;  %v362_v23 = vld [vmem:[%s736_s0 + $0xc] ss:$16 sm:%s93_s19]   ;;  %v91_v24 = vsel %vm6_vm0, %v361_v22, %v360_v20  ;;  %s110_s29 = smov 12  ;;  %v364_v27 = vld [vmem:[%s736_s0 + $0xb] ss:$16 sm:%s107_s28]   ;;  %s115_s5 = smov 48 }
   0xb   :  { %58 = vrot.lane.b32.xlu0 %v57_v21, %s425_s25  ;;  %v363_v25 = vld [vmem:[%s736_s0 + $0xc] ss:$16 sm:%s98_s24]   ;;  %v96_v26 = vsel %vm10_vm1, %v362_v23, %v91_v24  ;;  %s120_s6 = smov 192  ;;  %s129_s11 = smov 3  ;;  %vm214_vm12 = vcmask 523712   ;;  %vm236_vm13 = vcmask 458112  }
   0xc   :  { %v365_v28 = vld [vmem:[%s736_s0 + $0xb] ss:$16 sm:%s110_s29]   ;;  %v101_v29 = vsel %vm14_vm2, %v363_v25, %v96_v26  ;;  %s426_s12 = smov 96   ;;  %v368_v34 = vld [vmem:[%s736_s0 + $0xa] ss:$16 sm:%s129_s11]   ;;  %s132_s15 = smov 12 }
   0xd   :  { %v113_v30 = vsel %vm6_vm0, %v365_v28, %v364_v27  ;;  %v366_v31 = vld [vmem:[%s736_s0 + $0xb] ss:$16 sm:%s115_s5]   ;;  %102 = vrot.lane.b32.xlu1 %v101_v29, %s426_s12  ;;  %s137_s16 = smov 48  ;;  %s142_s21 = smov 192  ;;  %vm258_vm14 = vcmask 392512   ;;  %vm280_vm15 = vcmask 326912  }
   0xe   :  { %v367_v32 = vld [vmem:[%s736_s0 + $0xb] ss:$16 sm:%s120_s6]   ;;  %v118_v33 = vsel %vm10_vm1, %v366_v31, %v113_v30  ;;  %v369_v36 = vld [vmem:[%s736_s0 + $0xa] ss:$16 sm:%s132_s15]   ;;  %s427_s22 = smov 88   ;;  %s151_s25 = smov 3 }
   0xf   :  { %v123_v35 = vsel %vm14_vm2, %v367_v32, %v118_v33  ;;  %v370_v37 = vld [vmem:[%s736_s0 + $0xa] ss:$16 sm:%s137_s16]   ;;  %v135_v38 = vsel %vm6_vm0, %v369_v36, %v368_v34  ;;  %s154_s26 = smov 12  ;;  %v372_v41 = vld [vmem:[%s736_s0 + $0x9] ss:$16 sm:%s151_s25]   ;;  %s159_s2 = smov 48 }
  0x10   :  { %124 = vrot.lane.b32.xlu0 %v123_v35, %s427_s22  ;;  %v371_v39 = vld [vmem:[%s736_s0 + $0xa] ss:$16 sm:%s142_s21]   ;;  %v140_v40 = vsel %vm10_vm1, %v370_v37, %v135_v38  ;;  %s164_s3 = smov 192  ;;  %s173_s8 = smov 3 }
  0x11   :  { %v373_v42 = vld [vmem:[%s736_s0 + $0x9] ss:$16 sm:%s154_s26]   ;;  %v145_v43 = vsel %vm14_vm2, %v371_v39, %v140_v40  ;;  %s428_s9 = smov 80   ;;  %v376_v48 = vld [vmem:[%s736_s0 + $0x8] ss:$16 sm:%s173_s8]   ;;  %s176_s12 = smov 12 }
  0x12   :  { %v157_v44 = vsel %vm6_vm0, %v373_v42, %v372_v41  ;;  %v374_v45 = vld [vmem:[%s736_s0 + $0x9] ss:$16 sm:%s159_s2]   ;;  %146 = vrot.lane.b32.xlu1 %v145_v43, %s428_s9  ;;  %s181_s13 = smov 48  ;;  %s186_s18 = smov 192 }
  0x13   :  { %v375_v46 = vld [vmem:[%s736_s0 + $0x9] ss:$16 sm:%s164_s3]   ;;  %v162_v47 = vsel %vm10_vm1, %v374_v45, %v157_v44  ;;  %v377_v50 = vld [vmem:[%s736_s0 + $0x8] ss:$16 sm:%s176_s12]   ;;  %s429_s19 = smov 72   ;;  %s195_s22 = smov 3 }
  0x14   :  { %v167_v49 = vsel %vm14_vm2, %v375_v46, %v162_v47  ;;  %v378_v51 = vld [vmem:[%s736_s0 + $0x8] ss:$16 sm:%s181_s13]   ;;  %v179_v52 = vsel %vm6_vm0, %v377_v50, %v376_v48  ;;  %s198_s23 = smov 12  ;;  %v380_v55 = vld [vmem:[%s736_s0 + $0x7] ss:$16 sm:%s195_s22]   ;;  %s203_s28 = smov 48 }
  0x15   :  { %168 = vrot.lane.b32.xlu0 %v167_v49, %s429_s19  ;;  %v379_v53 = vld [vmem:[%s736_s0 + $0x8] ss:$16 sm:%s186_s18]   ;;  %v184_v54 = vsel %vm10_vm1, %v378_v51, %v179_v52  ;;  %s208_s29 = smov 192  ;;  %s217_s5 = smov 3 }
  0x16   :  { %v381_v56 = vld [vmem:[%s736_s0 + $0x7] ss:$16 sm:%s198_s23]   ;;  %v189_v57 = vsel %vm14_vm2, %v379_v53, %v184_v54  ;;  %s430_s6 = smov 64   ;;  %v384_v62 = vld [vmem:[%s736_s0 + $0x6] ss:$16 sm:%s217_s5]   ;;  %s220_s9 = smov 12 }
  0x17   :  { %v201_v58 = vsel %vm6_vm0, %v381_v56, %v380_v55  ;;  %v382_v59 = vld [vmem:[%s736_s0 + $0x7] ss:$16 sm:%s203_s28]   ;;  %190 = vrot.lane.b32.xlu1 %v189_v57, %s430_s6  ;;  %s225_s10 = smov 48  ;;  %s230_s15 = smov 192 }
  0x18   :  { %v383_v60 = vld [vmem:[%s736_s0 + $0x7] ss:$16 sm:%s208_s29]   ;;  %v206_v61 = vsel %vm10_vm1, %v382_v59, %v201_v58  ;;  %v385_v0 = vld [vmem:[%s736_s0 + $0x6] ss:$16 sm:%s220_s9]   ;;  %s431_s16 = smov 56   ;;  %s239_s19 = smov 3 }
  0x19   :  { %v211_v63 = vsel %vm14_vm2, %v383_v60, %v206_v61  ;;  %v386_v1 = vld [vmem:[%s736_s0 + $0x6] ss:$16 sm:%s225_s10]   ;;  %v223_v2 = vsel %vm6_vm0, %v385_v0, %v384_v62  ;;  %s242_s20 = smov 12  ;;  %v388_v5 = vld [vmem:[%s736_s0 + $0x5] ss:$16 sm:%s239_s19]   ;;  %s247_s25 = smov 48 }
  0x1a   :  { %212 = vrot.lane.b32.xlu0 %v211_v63, %s431_s16  ;;  %v387_v3 = vld [vmem:[%s736_s0 + $0x6] ss:$16 sm:%s230_s15]   ;;  %v228_v4 = vsel %vm10_vm1, %v386_v1, %v223_v2  ;;  %s252_s26 = smov 192  ;;  %s261_s2 = smov 3 }
  0x1b   :  { %v389_v6 = vld [vmem:[%s736_s0 + $0x5] ss:$16 sm:%s242_s20]   ;;  %v233_v7 = vsel %vm14_vm2, %v387_v3, %v228_v4  ;;  %s432_s3 = smov 48   ;;  %v392_v12 = vld [vmem:[%s736_s0 + $0x4] ss:$16 sm:%s261_s2]   ;;  %s264_s6 = smov 12 }
  0x1c   :  { %v245_v8 = vsel %vm6_vm0, %v389_v6, %v388_v5  ;;  %v390_v9 = vld [vmem:[%s736_s0 + $0x5] ss:$16 sm:%s247_s25]   ;;  %234 = vrot.lane.b32.xlu1 %v233_v7, %s432_s3  ;;  %s269_s7 = smov 48  ;;  %s274_s12 = smov 192 }
  0x1d   :  { %v391_v10 = vld [vmem:[%s736_s0 + $0x5] ss:$16 sm:%s252_s26]   ;;  %v250_v11 = vsel %vm10_vm1, %v390_v9, %v245_v8  ;;  %v393_v14 = vld [vmem:[%s736_s0 + $0x4] ss:$16 sm:%s264_s6]   ;;  %s433_s13 = smov 40   ;;  %s283_s16 = smov 3 }
  0x1e   :  { %v255_v13 = vsel %vm14_vm2, %v391_v10, %v250_v11  ;;  %v394_v15 = vld [vmem:[%s736_s0 + $0x4] ss:$16 sm:%s269_s7]   ;;  %v267_v16 = vsel %vm6_vm0, %v393_v14, %v392_v12  ;;  %s286_s17 = smov 12  ;;  %v396_v19 = vld [vmem:[%s736_s0 + $0x3] ss:$16 sm:%s283_s16]   ;;  %s291_s22 = smov 48 }
  0x1f   :  { %256 = vrot.lane.b32.xlu0 %v255_v13, %s433_s13  ;;  %v395_v17 = vld [vmem:[%s736_s0 + $0x4] ss:$16 sm:%s274_s12]   ;;  %v272_v18 = vsel %vm10_vm1, %v394_v15, %v267_v16  ;;  %s296_s23 = smov 192  ;;  %s305_s28 = smov 3 }
  0x20   :  { %v397_v20 = vld [vmem:[%s736_s0 + $0x3] ss:$16 sm:%s286_s17]   ;;  %v277_v21 = vsel %vm14_vm2, %v395_v17, %v272_v18  ;;  %s434_s29 = smov 32   ;;  %v400_v26 = vld [vmem:[%s736_s0 + $0x2] ss:$16 sm:%s305_s28]   ;;  %s308_s3 = smov 12 }
  0x21   :  { %v289_v22 = vsel %vm6_vm0, %v397_v20, %v396_v19  ;;  %v398_v23 = vld [vmem:[%s736_s0 + $0x3] ss:$16 sm:%s291_s22]   ;;  %278 = vrot.lane.b32.xlu1 %v277_v21, %s434_s29  ;;  %s313_s4 = smov 48  ;;  %s318_s9 = smov 192 }
  0x22   :  { %v399_v24 = vld [vmem:[%s736_s0 + $0x3] ss:$16 sm:%s296_s23]   ;;  %v294_v25 = vsel %vm10_vm1, %v398_v23, %v289_v22  ;;  %v401_v28 = vld [vmem:[%s736_s0 + $0x2] ss:$16 sm:%s308_s3]   ;;  %s435_s10 = smov 24   ;;  %s327_s13 = smov 3 }
  0x23   :  { %v299_v27 = vsel %vm14_vm2, %v399_v24, %v294_v25  ;;  %v402_v29 = vld [vmem:[%s736_s0 + $0x2] ss:$16 sm:%s313_s4]   ;;  %v311_v30 = vsel %vm6_vm0, %v401_v28, %v400_v26  ;;  %s330_s14 = smov 12  ;;  %v404_v33 = vld [vmem:[%s736_s0 + $0x1] ss:$16 sm:%s327_s13]   ;;  %s335_s19 = smov 48 }
  0x24   :  { %300 = vrot.lane.b32.xlu0 %v299_v27, %s435_s10  ;;  %v403_v31 = vld [vmem:[%s736_s0 + $0x2] ss:$16 sm:%s318_s9]   ;;  %v316_v32 = vsel %vm10_vm1, %v402_v29, %v311_v30  ;;  %s340_s20 = smov 192  ;;  %s2_s25 = smov 3 }
  0x25   :  { %v405_v34 = vld [vmem:[%s736_s0 + $0x1] ss:$16 sm:%s330_s14]   ;;  %v321_v35 = vsel %vm14_vm2, %v403_v31, %v316_v32  ;;  %s436_s26 = smov 16   ;;  %s4_s27 = smov 12  ;;  %v3_v40 = vld [vmem:[%s736_s0] ss:$16 sm:%s2_s25]  }
  0x26   :  { %v333_v36 = vsel %vm6_vm0, %v405_v34, %v404_v33  ;;  %v406_v37 = vld [vmem:[%s736_s0 + $0x1] ss:$16 sm:%s335_s19]   ;;  %322 = vrot.lane.b32.xlu1 %v321_v35, %s436_s26  ;;  %s8_s28 = smov 48  ;;  %s12_s2 = smov 192 }
  0x27   :  { %v407_v38 = vld [vmem:[%s736_s0 + $0x1] ss:$16 sm:%s340_s20]   ;;  %v338_v39 = vsel %vm10_vm1, %v406_v37, %v333_v36  ;;  %v5_v42 = vld [vmem:[%s736_s0] ss:$16 sm:%s4_s27]   ;;  %s437_s7 = smov 8  }
  0x28   :  { %v343_v41 = vsel %vm14_vm2, %v407_v38, %v338_v39  ;;  %v9_v43 = vld [vmem:[%s736_s0] ss:$16 sm:%s8_s28]   ;;  %v7_v44 = vsel %vm6_vm0, %v5_v42, %v3_v40  ;;  %vm302_vm0 = vcmask 261312  }
  0x29   :  { %344 = vrot.lane.b32.xlu0 %v343_v41, %s437_s7  ;;  %v13_v45 = vld [vmem:[%s736_s0] ss:$16 sm:%s12_s2]   ;;  %v11_v46 = vsel %vm10_vm1, %v9_v43, %v7_v44  ;;  %vm324_vm1 = vcmask 195712  }
  0x2a   :  { %v15_v47 = vsel %vm14_vm2, %v13_v45, %v11_v46  ;;  %vm346_vm2 = vcmask 130112  }
  0x2b   :  { %17 = vst.msk [vmem:[%s737_s1] sm:$0xff] %vm16_vm3, %v15_v47  }
  0x78   :  { %v37_v48 = vpop.permute.xlu0 %36  }
  0x79   :  { %39 = vst.msk [vmem:[%s737_s1] sm:$0xff] %vm38_vm4, %v37_v48  }
  0x7a   :  { %v81_v49 = vpop.permute.xlu1 %80  }
  0x7d   :  { %v59_v50 = vpop.permute.xlu0 %58  }
  0x7e   :  { %61 = vst.msk [vmem:[%s737_s1] sm:$0xff] %vm60_vm5, %v59_v50  }
  0x7f   :  { %83 = vst.msk [vmem:[%s737_s1] sm:$0xff] %vm82_vm6, %v81_v49   ;;  %v103_v51 = vpop.permute.xlu1 %102  }
  0x80   :  { %105 = vst.msk [vmem:[%s737_s1] sm:$0xff] %vm104_vm7, %v103_v51  }
  0x82   :  { %v125_v52 = vpop.permute.xlu0 %124  }
  0x83   :  { %127 = vst.msk [vmem:[%s737_s1] sm:$0xff] %vm126_vm8, %v125_v52  }
  0x84   :  { %v147_v53 = vpop.permute.xlu1 %146  }
  0x85   :  { %149 = vst.msk [vmem:[%s737_s1] sm:$0xff] %vm148_vm9, %v147_v53  }
  0x87   :  { %v169_v54 = vpop.permute.xlu0 %168  }
  0x88   :  { %171 = vst.msk [vmem:[%s737_s1] sm:$0xff] %vm170_vm10, %v169_v54  }
  0x89   :  { %v191_v55 = vpop.permute.xlu1 %190  }
  0x8a   :  { %193 = vst.msk [vmem:[%s737_s1] sm:$0xff] %vm192_vm11, %v191_v55  }
  0x8c   :  { %v213_v56 = vpop.permute.xlu0 %212  }
  0x8d   :  { %215 = vst.msk [vmem:[%s737_s1] sm:$0xff] %vm214_vm12, %v213_v56  }
  0x8e   :  { %v235_v57 = vpop.permute.xlu1 %234  }
  0x8f   :  { %237 = vst.msk [vmem:[%s737_s1] sm:$0xff] %vm236_vm13, %v235_v57  }
  0x91   :  { %v257_v58 = vpop.permute.xlu0 %256  }
  0x92   :  { %259 = vst.msk [vmem:[%s737_s1] sm:$0xff] %vm258_vm14, %v257_v58  }
  0x93   :  { %v279_v59 = vpop.permute.xlu1 %278  }
  0x94   :  { %281 = vst.msk [vmem:[%s737_s1] sm:$0xff] %vm280_vm15, %v279_v59  }
  0x96   :  { %v301_v60 = vpop.permute.xlu0 %300  }
  0x97   :  { %303 = vst.msk [vmem:[%s737_s1] sm:$0xff] %vm302_vm0, %v301_v60  }
  0x98   :  { %v323_v61 = vpop.permute.xlu1 %322  }
  0x99   :  { %325 = vst.msk [vmem:[%s737_s1] sm:$0xff] %vm324_vm1, %v323_v61  }
  0x9b   :  { %v345_v62 = vpop.permute.xlu0 %344  }
  0x9c   :  { %347 = vst.msk [vmem:[%s737_s1] sm:$0xff] %vm346_vm2, %v345_v62  }

// kernel: _forward_jit.1
= control target key start
LH: loop header
LB: loop body
LE: loop exit
PB: predicated region body
PF: predicated region fallthrough
CT: control target
= control target key end

     0   :  { %s1174_s18 = smov 0   ;;  %s1361_s0 = inlined_call_operand.vmem [shape: f32[2,18,128], index: 0, kind: input, shape index: {}]   ;;  %s1362_s1 = inlined_call_operand.vmem [shape: f32[2,3,128,128], index: 1, kind: input, shape index: {}]   ;;  %s1363_s2 = inlined_call_operand.vmem [shape: f32[2,2,8], index: 2, kind: input, shape index: {}]   ;;  %s1364_s3 = inlined_call_operand.vmem [shape: f32[128,8], index: 3, kind: input, shape index: {}]   ;;  %s1365_s4 = inlined_call_operand.vmem [shape: f32[8,128], index: 4, kind: input, shape index: {}]   ;;  %s1366_s5 = inlined_call_operand.vmem [shape: f32[2,16,128], index: 5, kind: output, shape index: {}]  }
   0x1 LB: > { %s1180_s19 = sadd.s32 4294967295, %s1140_s18   ;;  %p847_p0 = scmp.ge.s32.totalorder %s1140_s18, 1  ;;  %s1140_s18 = sphi %s1174_s18, %s15_s18  }
   0x2   : > { %p191_p1 = scmp.lt.s32.totalorder %s1140_s18, 3 }
   0x4   : > { %p192_p2 = pnand %p847_p0, %p191_p1 }
   0x5   : > { %p218_p3 = scmp.lt.s32.totalorder (!%p192_p2), %s1180_s19, 1  ;;  %p850_p4 = scmp.ne.s32.totalorder (!%p192_p2), %s1180_s19, 0 }
   0x6   : > { %195 = sbr.rel (%p192_p2) target bundleno = 749 (0x2ed), region = 40 }
   0xb   : > { %s219_s20 = scalar_select %p218_p3, %s1180_s19, 1 }
   0xc   : > { %230 = sbr.rel (%p850_p4) target bundleno = 21 (0x15), region = 44 }
   0xd   : > { %s1121_s21 = smul.u32 384, %s219_s20  ;;  %s849_s22 = sshll.u32 %s219_s20, 1 }
   0xe   : > { %s1189_s25 = scalar_lea.vmem %s1363_s2, %s849_s22 }
   0xf   : > { %s1194_s28 = scalar_lea.vmem %s1362_s1, %s1121_s21 }
  0x11   : > { %v231_v0 = vld [vmem:[%s1361_s0] sm:$0xff]  ;;  %v232_v1 = vld [vmem:[%s1361_s0 + $0x8] sm:$0xff]  ;;  %v233_v2 = vld [vmem:[%s1361_s0 + $0x10] sm:$0x3] }
  0x12   : > { %237 = vst [vmem:[#allocation2] sm:$0xff] %v231_v0  ;;  %238 = vst [vmem:[#allocation2 + $0x8] sm:$0xff] %v232_v1  ;;  %v234_v3 = vld [vmem:[%s1361_s0 + $0x18] sm:$0xff]  ;;  %v235_v4 = vld [vmem:[%s1361_s0 + $0x20] sm:$0xff] }
  0x13   : > { %239 = vst [vmem:[#allocation2 + $0x10] sm:$0x3] %v233_v2  ;;  %v236_v5 = vld [vmem:[%s1361_s0 + $0x28] sm:$0x3]  ;;  %240 = vst [vmem:[#allocation2 + $0x18] sm:$0xff] %v234_v3 }
  0x14   : > { %241 = vst [vmem:[#allocation2 + $0x20] sm:$0xff] %v235_v4  ;;  %242 = vst [vmem:[#allocation2 + $0x28] sm:$0x3] %v236_v5 }
  0x15 PF: > { %v866_v6 = vld [vmem:[%s1194_s28 + $0xf8] sm:$0xff]  ;;  %v865_v8 = vld [vmem:[%s1194_s28 + $0xf0] sm:$0xff]  ;;  %v864_v10 = vld [vmem:[%s1194_s28 + $0xe8] sm:$0xff]  ;;  %v1142_v3 = vmov 0.0   ;;  %vm1143_vm0 = vmmov 0   ;;  %vm586_vm1 = vcmask 1040384  }
  0x16   : > { %v262_v7 = vld [vmem:[%s1194_s28 + $0x78] sm:$0xff]  ;;  %967 = vmatprep.subr.mxu0 %v866_v6  ;;  %v261_v9 = vld [vmem:[%s1194_s28 + $0x70] sm:$0xff]  ;;  %v260_v11 = vld [vmem:[%s1194_s28 + $0x68] sm:$0xff]  ;;  %vm694_vm2 = vcmask 64512   ;;  %p884_p5 = scmp.ge.s32.totalorder %s1180_s19, 1 }
  0x17   : > { %1005 = vmatprep.subr.mxu1 %v262_v7  ;;  %968 = vmatpush3.msra.mxu0 %v866_v6  ;;  %v863_v12 = vld [vmem:[%s1194_s28 + $0xe0] sm:$0xff]  ;;  %v862_v14 = vld [vmem:[%s1194_s28 + $0xd8] sm:$0xff]  ;;  %v861_v16 = vld [vmem:[%s1194_s28 + $0xd0] sm:$0xff] }
  0x18   : > { %1006 = vmatpush3.msra.mxu1 %v262_v7  ;;  %969 = vmatprep.subr.mxu0 %v865_v8  ;;  %v259_v13 = vld [vmem:[%s1194_s28 + $0x60] sm:$0xff]  ;;  %v258_v15 = vld [vmem:[%s1194_s28 + $0x58] sm:$0xff]  ;;  %v257_v17 = vld [vmem:[%s1194_s28 + $0x50] sm:$0xff] }
  0x19   : > { %1007 = vmatprep.subr.mxu1 %v261_v9  ;;  %970 = vmatpush3.msra.mxu0 %v865_v8  ;;  %v860_v18 = vld [vmem:[%s1194_s28 + $0xc8] sm:$0xff]  ;;  %v859_v20 = vld [vmem:[%s1194_s28 + $0xc0] sm:$0xff]  ;;  %v858_v22 = vld [vmem:[%s1194_s28 + $0xb8] sm:$0xff] }
  0x1a   : > { %1008 = vmatpush3.msra.mxu1 %v261_v9  ;;  %971 = vmatprep.subr.mxu0 %v864_v10  ;;  %v256_v19 = vld [vmem:[%s1194_s28 + $0x48] sm:$0xff]  ;;  %v255_v21 = vld [vmem:[%s1194_s28 + $0x40] sm:$0xff]  ;;  %v254_v23 = vld [vmem:[%s1194_s28 + $0x38] sm:$0xff] }
  0x1b   : > { %1009 = vmatprep.subr.mxu1 %v260_v11  ;;  %972 = vmatpush3.msra.mxu0 %v864_v10  ;;  %v857_v24 = vld [vmem:[%s1194_s28 + $0xb0] sm:$0xff]  ;;  %v856_v26 = vld [vmem:[%s1194_s28 + $0xa8] sm:$0xff]  ;;  %v855_v28 = vld [vmem:[%s1194_s28 + $0xa0] sm:$0xff] }
  0x1c   : > { %1010 = vmatpush3.msra.mxu1 %v260_v11  ;;  %973 = vmatprep.subr.mxu0 %v863_v12  ;;  %v253_v25 = vld [vmem:[%s1194_s28 + $0x30] sm:$0xff]  ;;  %v252_v27 = vld [vmem:[%s1194_s28 + $0x28] sm:$0xff]  ;;  %v251_v29 = vld [vmem:[%s1194_s28 + $0x20] sm:$0xff] }
  0x1d   : > { %1011 = vmatprep.subr.mxu1 %v259_v13  ;;  %974 = vmatpush3.msra.mxu0 %v863_v12  ;;  %v854_v30 = vld [vmem:[%s1194_s28 + $0x98] sm:$0xff]  ;;  %v853_v32 = vld [vmem:[%s1194_s28 + $0x90] sm:$0xff]  ;;  %v852_v34 = vld [vmem:[%s1194_s28 + $0x88] sm:$0xff] }
  0x1e   : > { %1012 = vmatpush3.msra.mxu1 %v259_v13  ;;  %975 = vmatprep.subr.mxu0 %v862_v14  ;;  %v250_v31 = vld [vmem:[%s1194_s28 + $0x18] sm:$0xff]  ;;  %v249_v33 = vld [vmem:[%s1194_s28 + $0x10] sm:$0xff]  ;;  %v248_v35 = vld [vmem:[%s1194_s28 + $0x8] sm:$0xff] }
  0x1f   : > { %1013 = vmatprep.subr.mxu1 %v258_v15  ;;  %976 = vmatpush3.msra.mxu0 %v862_v14  ;;  %v851_v36 = vld [vmem:[%s1194_s28 + $0x80] sm:$0xff]  ;;  %v264_v40 = vld [vmem:[#allocation2 + $0x9] sm:$0xff]  ;;  %v882_v42 = vld [vmem:[%s1194_s28 + $0x178] sm:$0xff] }
  0x20   : > { %1014 = vmatpush3.msra.mxu1 %v258_v15  ;;  %977 = vmatprep.subr.mxu0 %v861_v16  ;;  %v247_v37 = vld [vmem:[%s1194_s28] sm:$0xff]  ;;  %v244_v41 = vld [vmem:[#allocation2 + $0x8] sm:$0xff]  ;;  %v245_v44 = vld [vmem:[#allocation2 + $0x18] sm:$0xff] }
  0x21   : > { %1015 = vmatprep.subr.mxu1 %v257_v17  ;;  %978 = vmatpush3.msra.mxu0 %v861_v16  ;;  %v263_v38 = vld [vmem:[#allocation2 + $0x1] sm:$0xff]  ;;  %v265_v43 = vld [vmem:[#allocation2 + $0x19] sm:$0xff]  ;;  %v881_v45 = vld [vmem:[%s1194_s28 + $0x170] sm:$0xff] }
  0x22   : > { %1016 = vmatpush3.msra.mxu1 %v257_v17  ;;  %979 = vmatprep.subr.mxu0 %v860_v18  ;;  %v243_v39 = vld [vmem:[#allocation2] sm:$0xff]  ;;  %v880_v47 = vld [vmem:[%s1194_s28 + $0x168] sm:$0xff]  ;;  %v878_v51 = vld [vmem:[%s1194_s28 + $0x158] sm:$0xff] }
  0x23   : > { %1017 = vmatprep.subr.mxu1 %v256_v19  ;;  %980 = vmatpush3.msra.mxu0 %v860_v18  ;;  %v246_v46 = vld [vmem:[#allocation2 + $0x20] sm:$0xff]  ;;  %v877_v52 = vld [vmem:[%s1194_s28 + $0x150] sm:$0xff]  ;;  %v876_v53 = vld [vmem:[%s1194_s28 + $0x148] sm:$0xff] }
  0x24   : > { %1018 = vmatpush3.msra.mxu1 %v256_v19  ;;  %981 = vmatprep.subr.mxu0 %v859_v20  ;;  %v266_v48 = vld [vmem:[#allocation2 + $0x21] sm:$0xff]  ;;  %v874_v55 = vld [vmem:[%s1194_s28 + $0x138] sm:$0xff]  ;;  %v873_v56 = vld [vmem:[%s1194_s28 + $0x130] sm:$0xff] }
  0x25   : > { %1019 = vmatprep.subr.mxu1 %v255_v21  ;;  %982 = vmatpush3.msra.mxu0 %v859_v20  ;;  %v454_v49 = vld [vmem:[#allocation2 + $0x2] sm:$0xff]  ;;  %v870_v59 = vld [vmem:[%s1194_s28 + $0x118] sm:$0xff]  ;;  %v869_v60 = vld [vmem:[%s1194_s28 + $0x110] sm:$0xff] }
  0x26   : > { %1020 = vmatpush3.msra.mxu1 %v255_v21  ;;  %983 = vmatprep.subr.mxu0 %v858_v22  ;;  %v879_v50 = vld [vmem:[%s1194_s28 + $0x160] sm:$0xff]  ;;  %v872_v57 = vld [vmem:[%s1194_s28 + $0x128] sm:$0xff]  ;;  %v603_v2 = vld [vmem:[%s1364_s3 + $0x78] sm:$0xff] }
  0x27   : > { %1021 = vmatprep.subr.mxu1 %v254_v23  ;;  %984 = vmatpush3.msra.mxu0 %v858_v22  ;;  %v875_v54 = vld [vmem:[%s1194_s28 + $0x140] sm:$0xff]  ;;  %v868_v61 = vld [vmem:[%s1194_s28 + $0x108] sm:$0xff]  ;;  %v602_v4 = vld [vmem:[%s1364_s3 + $0x70] sm:$0xff] }
  0x28   : > { %1022 = vmatpush3.msra.mxu1 %v254_v23  ;;  %985 = vmatprep.subr.mxu0 %v857_v24  ;;  %v871_v58 = vld [vmem:[%s1194_s28 + $0x120] sm:$0xff]  ;;  %v455_v63 = vld [vmem:[#allocation2 + $0xa] sm:$0xff]  ;;  %v599_v7 = vld [vmem:[%s1364_s3 + $0x58] sm:$0xff] }
  0x29   : > { %1023 = vmatprep.subr.mxu1 %v253_v25  ;;  %986 = vmatpush3.msra.mxu0 %v857_v24  ;;  %v867_v62 = vld [vmem:[%s1194_s28 + $0x100] sm:$0xff]  ;;  %v601_v5 = vld [vmem:[%s1364_s3 + $0x68] sm:$0xff]  ;;  %v598_v8 = vld [vmem:[%s1364_s3 + $0x50] sm:$0xff] }
  0x2a   : > { %1024 = vmatpush3.msra.mxu1 %v253_v25  ;;  %987 = vmatprep.subr.mxu0 %v856_v26  ;;  %v456_v0 = vld [vmem:[#allocation2 + $0x1a] sm:$0xff]  ;;  %v457_v1 = vld [vmem:[#allocation2 + $0x22] sm:$0xff]  ;;  %v594_v12 = vld [vmem:[%s1364_s3 + $0x30] sm:$0xff] }
  0x2b   : > { %1025 = vmatprep.subr.mxu1 %v252_v27  ;;  %988 = vmatpush3.msra.mxu0 %v856_v26  ;;  %v600_v6 = vld [vmem:[%s1364_s3 + $0x60] sm:$0xff]  ;;  %v597_v9 = vld [vmem:[%s1364_s3 + $0x48] sm:$0xff]  ;;  %v595_v11 = vld [vmem:[%s1364_s3 + $0x38] sm:$0xff] }
  0x2c   : > { %1026 = vmatpush3.msra.mxu1 %v252_v27  ;;  %989 = vmatprep.subr.mxu0 %v855_v28  ;;  %v596_v10 = vld [vmem:[%s1364_s3 + $0x40] sm:$0xff]  ;;  %v593_v13 = vld [vmem:[%s1364_s3 + $0x28] sm:$0xff]  ;;  %v591_v15 = vld [vmem:[%s1364_s3 + $0x18] sm:$0xff] }
  0x2d   : > { %1027 = vmatprep.subr.mxu1 %v251_v29  ;;  %990 = vmatpush3.msra.mxu0 %v855_v28  ;;  %v592_v14 = vld [vmem:[%s1364_s3 + $0x20] sm:$0xff]  ;;  %v590_v16 = vld [vmem:[%s1364_s3 + $0x10] sm:$0xff]  ;;  %v589_v17 = vld [vmem:[%s1364_s3 + $0x8] sm:$0xff] }
  0x2e   : > { %1028 = vmatpush3.msra.mxu1 %v251_v29  ;;  %991 = vmatprep.subr.mxu0 %v854_v30  ;;  %v588_v18 = vld [vmem:[%s1364_s3] sm:$0xff] }
  0x2f   : > { %1029 = vmatprep.subr.mxu1 %v250_v31  ;;  %992 = vmatpush3.msra.mxu0 %v854_v30 }
  0x30   : > { %1030 = vmatpush3.msra.mxu1 %v250_v31  ;;  %993 = vmatprep.subr.mxu0 %v853_v32 }
  0x31   : > { %1031 = vmatprep.subr.mxu1 %v249_v33  ;;  %994 = vmatpush3.msra.mxu0 %v853_v32 }
  0x32   : > { %1032 = vmatpush3.msra.mxu1 %v249_v33  ;;  %995 = vmatprep.subr.mxu0 %v852_v34 }
  0x33   : > { %1033 = vmatprep.subr.mxu1 %v248_v35  ;;  %996 = vmatpush3.msra.mxu0 %v852_v34 }
  0x34   : > { %1034 = vmatpush3.msra.mxu1 %v248_v35  ;;  %997 = vmatprep.subr.mxu0 %v851_v36 }
  0x35   : > { %1035 = vmatprep.subr.mxu1 %v247_v37  ;;  %998 = vmatpush3.msra.mxu0 %v851_v36 }
  0x36   : > { %999 = vmatprep.mubr.f32.mxu0 %v263_v38  ;;  %1036 = vmatpush3.msra.mxu1 %v247_v37 }
  0x37   : > { %1037 = vmatprep.mubr.f32.mxu1 %v243_v39  ;;  %1000 = vmatmul.mubr.f32.vlgmr.msra.gmra.mxu0 %v264_v40 }
  0x38   : > { %1038 = vmatmul.mubr.f32.vlgmr.msra.gmra.mxu1 %v244_v41  ;;  %1043 = vmatprep.subr.mxu0 %v882_v42 }
  0x39   : > { %1002 = vmatprep.mubr.f32.mxu0 %v265_v43  ;;  %1044 = vmatpush3.msra.mxu0 %v882_v42 }
  0x3a   : > { %1040 = vmatprep.mubr.f32.mxu1 %v245_v44  ;;  %1045 = vmatprep.subr.mxu0 %v881_v45 }
  0x3b   : > { %1046 = vmatpush3.msra.mxu0 %v881_v45  ;;  %1081 = vmatprep.subr.mxu1 %v1142_v3 }
  0x3c   : > { %1041 = vmatmul.mubr.f32.gmra.mxu1 %v246_v46  ;;  %1047 = vmatprep.subr.mxu0 %v880_v47 }
  0x3d   : > { %1003 = vmatmul.mubr.f32.gmra.mxu0 %v266_v48  ;;  %1082 = vmatpush3.msra.mxu1 %v603_v2 }
  0x3e   : > { %1048 = vmatpush3.msra.mxu0 %v880_v47  ;;  %1075 = vmatprep.mubr.f32.mxu0 %v454_v49 }
  0x3f   : > { %1049 = vmatprep.subr.mxu0 %v879_v50  ;;  %1083 = vmatprep.subr.mxu1 %v1142_v3 }
  0x40   : > { %1050 = vmatpush3.msra.mxu0 %v879_v50  ;;  %1084 = vmatpush3.msra.mxu1 %v602_v4 }
  0x41   : > { %1051 = vmatprep.subr.mxu0 %v878_v51  ;;  %1085 = vmatprep.subr.mxu1 %v1142_v3 }
  0x42   : > { %1052 = vmatpush3.msra.mxu0 %v878_v51  ;;  %1086 = vmatpush3.msra.mxu1 %v601_v5 }
  0x43   : > { %1053 = vmatprep.subr.mxu0 %v877_v52  ;;  %1087 = vmatprep.subr.mxu1 %v1142_v3 }
  0x44   : > { %1054 = vmatpush3.msra.mxu0 %v877_v52  ;;  %1088 = vmatpush3.msra.mxu1 %v600_v6 }
  0x45   : > { %1055 = vmatprep.subr.mxu0 %v876_v53  ;;  %1089 = vmatprep.subr.mxu1 %v1142_v3 }
  0x46   : > { %1056 = vmatpush3.msra.mxu0 %v876_v53  ;;  %1090 = vmatpush3.msra.mxu1 %v599_v7 }
  0x47   : > { %1057 = vmatprep.subr.mxu0 %v875_v54  ;;  %1091 = vmatprep.subr.mxu1 %v1142_v3 }
  0x48   : > { %1058 = vmatpush3.msra.mxu0 %v875_v54  ;;  %1092 = vmatpush3.msra.mxu1 %v598_v8  ;;  %v680_v8 = vld [vmem:[%s1189_s25] sm:$0x3] }
  0x49   : > { %1059 = vmatprep.subr.mxu0 %v874_v55  ;;  %1093 = vmatprep.subr.mxu1 %v1142_v3 }
  0x4a   : > { %1060 = vmatpush3.msra.mxu0 %v874_v55  ;;  %1094 = vmatpush3.msra.mxu1 %v597_v9 }
  0x4b   : > { %1061 = vmatprep.subr.mxu0 %v873_v56  ;;  %1095 = vmatprep.subr.mxu1 %v1142_v3 }
  0x4c   : > { %1062 = vmatpush3.msra.mxu0 %v873_v56  ;;  %1096 = vmatpush3.msra.mxu1 %v596_v10 }
  0x4d   : > { %1063 = vmatprep.subr.mxu0 %v872_v57  ;;  %1097 = vmatprep.subr.mxu1 %v1142_v3 }
  0x4e   : > { %1064 = vmatpush3.msra.mxu0 %v872_v57  ;;  %1098 = vmatpush3.msra.mxu1 %v595_v11 }
  0x4f   : > { %1065 = vmatprep.subr.mxu0 %v871_v58  ;;  %1099 = vmatprep.subr.mxu1 %v1142_v3 }
  0x50   : > { %1066 = vmatpush3.msra.mxu0 %v871_v58  ;;  %1100 = vmatpush3.msra.mxu1 %v594_v12 }
  0x51   : > { %1067 = vmatprep.subr.mxu0 %v870_v59  ;;  %1101 = vmatprep.subr.mxu1 %v1142_v3 }
  0x52   : > { %1068 = vmatpush3.msra.mxu0 %v870_v59  ;;  %1102 = vmatpush3.msra.mxu1 %v593_v13 }
  0x53   : > { %1069 = vmatprep.subr.mxu0 %v869_v60  ;;  %1103 = vmatprep.subr.mxu1 %v1142_v3 }
  0x54   : > { %1070 = vmatpush3.msra.mxu0 %v869_v60  ;;  %1104 = vmatpush3.msra.mxu1 %v592_v14  ;;  %v768_v14 = vlaneseq }
  0x55   : > { %1071 = vmatprep.subr.mxu0 %v868_v61  ;;  %1105 = vmatprep.subr.mxu1 %v1142_v3 }
  0x56   : > { %1072 = vmatpush3.msra.mxu0 %v868_v61  ;;  %1113 = vmatprep.mubr.msk.f32.mxu1 %vm1143_vm0, %v1142_v3 }
  0x57   : > { %1073 = vmatprep.subr.mxu0 %v867_v62  ;;  %1106 = vmatpush3.msra.mxu1 %v591_v15  ;;  %v769_v15 = vshrl.u32 %v768_v14, 7 }
  0x58   : > { %1074 = vmatpush3.msra.mxu0 %v867_v62  ;;  %1107 = vmatprep.subr.mxu1 %v1142_v3  ;;  %v693_v62 = vld [vmem:[%s1365_s4] sm:$0xff] }
  0x59   : > { %1076 = vmatmul.mubr.f32.vlgmr.msra.gmra.mxu0 %v455_v63  ;;  %1108 = vmatpush3.msra.mxu1 %v590_v16  ;;  %v770_v16 = vsub.s32 0, %v769_v15 }
  0x5a   : > { %1078 = vmatprep.mubr.f32.mxu0 %v456_v0  ;;  %1109 = vmatprep.subr.mxu1 %v1142_v3 }
  0x5b   : > { %1110 = vmatpush3.msra.mxu1 %v589_v17  ;;  %v778_v17 = vsub.s32 1, %v769_v15 }
  0x5c   : > { %1111 = vmatprep.subr.mxu1 %v1142_v3 }
  0x5d   : > { %1079 = vmatmul.mubr.f32.gmra.mxu0 %v457_v1  ;;  %1112 = vmatpush3.msra.mxu1 %v588_v18 }
  0x5e   : > { %1116 = vmatprep.subr.mxu1 %v1142_v3 }
  0xf7   : > { %v1001_v19 = vpop.f32.mrf.mxu0 }
  0xf8   : > { %v1039_v20 = vpop.f32.mrf.mxu1 }
  0xf9   : > { %v350_v21 = vpop.f32.mrf.mxu0  ;;  %v441_v27 = vadd.f32 %v1039_v20, %v1001_v19 }
  0xfa   : > { %v435_v23 = vpop.f32.mrf.mxu1 }
  0xfb   : > { %v436_v28 = vadd.f32 %v435_v23, %v350_v21 }
  0xfc   : > { %v1042_v24 = vpop.f32.mrf.mxu1 }
  0xfd   : > { %v1004_v22 = vpop.f32.mrf.mxu0 }
  0xfe   : > { %v445_v29 = vpop.f32.mrf.mxu1  ;;  %v451_v34 = vadd.f32 %v1042_v24, %v1004_v22 }
  0xff   : > { %v360_v25 = vpop.f32.mrf.mxu0 }
 0x100   : > { %v446_v35 = vadd.f32 %v445_v29, %v360_v25 }
 0x119   : > { %v1077_v26 = vpop.f32.mrf.mxu0 }
 0x11a   : > { %v1330_v31 = vadd.f32 %v1077_v26, %v441_v27 }
 0x11b   : > { %v541_v30 = vpop.f32.mrf.mxu0 }
 0x11c   : > { %v560_v32 = vadd.f32 %v541_v30, %v436_v28  ;;  %v574_v38 = vmul.f32 %v1330_v31, %v1330_v31 }
 0x11d   : > { %v1080_v33 = vpop.f32.mrf.mxu0 }
 0x11e   : > { %v573_v36 = vmul.f32 %v560_v32, %v560_v32  ;;  %v564_v39 = vadd.f32 %v1330_v31, %v560_v32  ;;  %v563_v40 = vadd.f32 %v1080_v33, %v451_v34 }
 0x11f   : > { %v551_v37 = vpop.f32.mrf.mxu0 }
 0x120   : > { %v562_v41 = vadd.f32 %v551_v37, %v446_v35  ;;  %v577_v42 = vadd.f32 %v574_v38, %v573_v36  ;;  %v576_v45 = vmul.f32 %v563_v40, %v563_v40 }
 0x122   : > { %v565_v43 = vadd.f32 %v564_v39, %v562_v41  ;;  %v575_v44 = vmul.f32 %v562_v41, %v562_v41 }
 0x124   : > { %v566_v46 = vadd.f32 %v565_v43, %v563_v40  ;;  %v578_v47 = vadd.f32 %v577_v42, %v575_v44 }
 0x126   : > { %v567_v48 = vrot.slane %v566_v46, 4  ;;  %v579_v49 = vadd.f32 %v578_v47, %v576_v45 }
 0x128   : > { %v568_v50 = vadd.f32 %v567_v48, %v566_v46  ;;  %v580_v51 = vrot.slane %v579_v49, 4 }
 0x12a   : > { %v569_v52 = vrot.slane %v568_v50, 2  ;;  %v581_v53 = vadd.f32 %v580_v51, %v579_v49 }
 0x12c   : > { %v570_v54 = vadd.f32 %v569_v52, %v568_v50  ;;  %v582_v55 = vrot.slane %v581_v53, 2 }
 0x12e   : > { %v571_v56 = vrot.slane %v570_v54, 1  ;;  %v583_v57 = vadd.f32 %v582_v55, %v581_v53 }
 0x130   : > { %v584_v58 = vrot.slane %v583_v57, 1  ;;  %v572_v59 = vadd.f32 %v571_v56, %v570_v54 }
 0x132   : > { %v585_v60 = vadd.f32 %v584_v58, %v583_v57 }
 0x134   : > { %v587_v61 = vsel %vm586_vm1, %v572_v59, %v585_v60 }
 0x135   : > { %1114 = vmatmul.mubr.f32.vlgmr.msra.gmra.mxu1 %v587_v61 }
 0x136   : > { %1118 = vmatprep.mubr.msk.f32.mxu1 %vm1143_vm0, %v1142_v3  ;;  %1117 = vmatpush3.msra.mxu1 %v693_v62 }
 0x1f5   : > { %v670_v63 = vpop.f32.mrf.mxu1 }
 0x1f6   : > { %v674_v0 = vmul.f32 0.001953125, %v670_v63 }
 0x1f7   : > { %v1115_v1 = vpop.f32.mrf.mxu1 }
 0x1f8   : > { %v675_v2 = vmul.f32 %v674_v0, %v674_v0 }
 0x1fa   : > { %v677_v4 = vrot.slane %v675_v2, 7 }
 0x1fc   : > { %v679_v5 = vsub.f32 %v674_v0, %v677_v4 }
 0x1fe   : > { %v681_v6 = vadd.f32 1e-05, %v679_v5 }
 0x200   : > { %1132 = vrsqrt.f32 %v681_v6 }
 0x20d   : > { %v1133_v7 = vpop.eup %1132 }
 0x20e   : > { %v684_v9 = vrot.slane %v1133_v7, 1 }
 0x210   : > { %v686_v10 = vmul.f32 %v684_v9, %v680_v8 }
 0x212   : > { %v687_v11 = vmul.f32 %v686_v10, %v674_v0 }
 0x214   : > { %v689_v12 = vrot.slane %v687_v11, 7 }
 0x216   : > { %v691_v3 = vsub.f32 %v680_v8, %v689_v12 }
 0x218   : > { %v692_v13 = vsel %vm586_vm1, %v686_v10, %v691_v3 }
 0x219   : > { %1119 = vmatmul.mubr.msk.f32.vlgmr.msra.gmra.mxu1 %vm694_vm2, %v692_v13 }
 0x2d9   : > { %v764_v18 = vpop.f32.mrf.mxu1 }
 0x2da   : > { %v771_v19 = vrot.slane %v764_v18, %v770_v16  ;;  %v779_v20 = vrot.slane %v764_v18, %v778_v17 }
 0x2db   : > { %v1120_v21 = vpop.f32.mrf.mxu1 }
 0x2dc   : > { %v772_v22 = vmul.f32 %v771_v19, %v560_v32  ;;  %v773_v23 = vmul.f32 %v771_v19, %v1330_v31  ;;  %v774_v24 = vmul.f32 %v771_v19, %v562_v41  ;;  %v775_v25 = vmul.f32 %v771_v19, %v563_v40  ;;  %791 = sbr.rel (%p884_p5) target bundleno = 740 (0x2e4), region = 48 }
 0x2de   : > { %v780_v26 = vadd.f32 %v779_v20, %v772_v22  ;;  %v781_v27 = vadd.f32 %v779_v20, %v773_v23  ;;  %v782_v28 = vadd.f32 %v779_v20, %v774_v24  ;;  %v783_v29 = vadd.f32 %v779_v20, %v775_v25 }
 0x2e0   : > { %v784_v30 = vmax.f32 %v780_v26, 0.0  ;;  %v785_v33 = vmax.f32 %v781_v27, 0.0  ;;  %v786_v34 = vmax.f32 %v782_v28, 0.0  ;;  %v787_v35 = vmax.f32 %v783_v29, 0.0 }
 0x2e2   : > { %792 = vst [vmem:[#allocation2 + $0x1] sm:$0xff] %v784_v30  ;;  %793 = vst [vmem:[#allocation2 + $0x9] sm:$0xff] %v785_v33 }
 0x2e3   : > { %794 = vst [vmem:[#allocation2 + $0x19] sm:$0xff] %v786_v34  ;;  %795 = vst [vmem:[#allocation2 + $0x21] sm:$0xff] %v787_v35 }
 0x2e4 PF: > { %p885_p6 = scmp.ne.s32.totalorder %s1180_s19, 1 }
 0x2e6   : > { %799 = sbr.rel (%p885_p6) target bundleno = 749 (0x2ed), region = 52 }
 0x2eb   : > { %800 = vst [vmem:[%s1366_s5] sm:$0xff] %v784_v30  ;;  %801 = vst [vmem:[%s1366_s5 + $0x8] sm:$0xff] %v785_v33 }
 0x2ec   : > { %802 = vst [vmem:[%s1366_s5 + $0x10] sm:$0xff] %v786_v34  ;;  %803 = vst [vmem:[%s1366_s5 + $0x18] sm:$0xff] %v787_v35 }
 0x2ed PF: > { %s15_s18 = sadd.s32 1, %s1140_s18  }
 0x2ee   : > { %p12_p7 = scmp.ge.s32.totalorder %s15_s18, 4  }
 0x2f0   :  { %14 = sbr.rel (!%p12_p7) target bundleno = 1 (0x1), region = 83 }

</bundles_post_ra>
